<compile_context>
chip_gen: v7x
topology: tpu7x:2x2x1
jax: 0.10.0
libtpu: 0.0.40
codegen_flags: <defaults>
</compile_context>

<pallas_src>
import functools
import math

import jax
import jax.numpy as jnp
from jax import lax
from jax.experimental import pallas as pl
from jax.experimental.pallas import tpu as pltpu


def _fusion_conv_glu_kernel(x_ref, w_ref, bias_ref, edge_ref, o_ref, *, C, T, M):
    """One (batch, Fr-chunk) tile per grid step.

    x_ref   : [1, 1, C, (frt+2)*T + 2] bf16  halo-padded, spatially flattened input chunk
    w_ref   : [3, 2C, 3C] bf16               per-dx conv weights, channel repeat folded in,
                                             contraction axis ordered (dy-major, channel-minor)
    bias_ref: [2C, 1] f32                    conv bias
    edge_ref: [2, M]  f32                    T-boundary validity masks for dx = -1 / +1
    o_ref   : [1, C, M]                      GLU output chunk, M = frt*T on the lane axis
    """

    def taps(dx):
        # Stack the three dy-shifted windows of this dx group along the contraction axis.
        cols = []
        for dy in (-1, 0, 1):
            start = 1 + (dy + 1) * T + dx
            cols.append(x_ref[0, 0, :, start:start + M])       # [C, M] bf16
        return jnp.concatenate(cols, axis=0)                   # [3C, M] bf16 (VMEM-local)

    # Three independent K=3C matmuls; no serial acc chain between MXU results.
    p_c = jnp.dot(w_ref[1], taps(0), preferred_element_type=jnp.float32)
    p_l = jnp.dot(w_ref[0], taps(-1), preferred_element_type=jnp.float32)
    p_r = jnp.dot(w_ref[2], taps(1), preferred_element_type=jnp.float32)

    # Edge masks applied once, post-matmul, in f32 (equivalent to masking every tap input
    # of the group, since the mask is per output lane and the contraction is over channels).
    left = edge_ref[0:1, :]      # 0 where t == 0      (kills wrapped dx = -1 taps)
    right = edge_ref[1:2, :]     # 0 where t == T - 1  (kills wrapped dx = +1 taps)
    acc = (p_c + bias_ref[...]) + p_l * left + p_r * right     # [2C, M] f32

    a = acc[:C, :]                                             # GLU value half
    g = acc[C:, :]                                             # GLU gate half
    gate = pl.reciprocal(1.0 + jnp.exp(-g), approx=True)       # sigmoid: EUP exp + EUP rcp
    o_ref[0, :, :] = (a * gate).astype(o_ref.dtype)


class FusionLayerPallas:
    """Pallas port of SCNet FusionLayer: skip-add -> channel-repeat -> Conv2d(2C,2C,3,1,1) -> GLU."""

    def __init__(self, channels, key, kernel_size=3, stride=1, padding=1,
                 out_dtype=jnp.float32):
        # TODO(synk): generalize to non-default (kernel_size, stride, padding); SCNet only
        # instantiates FusionLayer with the 3/1/1 defaults this kernel specializes to.
        assert (kernel_size, stride, padding) == (3, 1, 1)
        self.channels = channels
        # out_dtype=jnp.bfloat16 halves output HBM writeback / output double-buffer VMEM if
        # the downstream decoder stage tolerates it; default f32 matches the PyTorch module.
        self.out_dtype = out_dtype
        c2 = 2 * channels
        fan_in = c2 * kernel_size * kernel_size
        bound = 1.0 / math.sqrt(fan_in)
        wkey, bkey = jax.random.split(key)
        self.weight = jax.random.uniform(
            wkey, (c2, c2, kernel_size, kernel_size), jnp.float32, -bound, bound)
        self.bias = jax.random.uniform(bkey, (c2,), jnp.float32, -bound, bound)

    @staticmethod
    def _pick_fr_tile(C, Fr, T, out_bytes, budget=20 << 20):
        """Largest Fr chunk whose per-step VMEM working set stays under `budget`."""

        def per_step_bytes(frt):
            Lc = (frt + 2) * T + 2
            Mc = frt * T
            return (2 * C * Lc * 2            # bf16 input, double-buffered
                    + 2 * C * Mc * out_bytes  # output, double-buffered
                    + 4 * 2 * C * Mc * 4      # live f32 partials / GLU temporaries
                    + 2 * Mc * 4)             # edge masks

        frt = Fr
        while frt > 8 and per_step_bytes(frt) > budget:
            frt = -(-frt // 2)
        if frt < Fr:
            # Keep every chunk's output lane-dense: frt*T must be a multiple of 128.
            lane_q = 128 // math.gcd(T, 128)
            frt = min(Fr, -(-frt // lane_q) * lane_q)
        return frt, per_step_bytes(frt)

    def __call__(self, x, skip=None):
        B, C, Fr, T = x.shape
        assert C == self.channels
        C2 = 2 * C
        out_dtype = self.out_dtype

        frt, step_bytes = self._pick_fr_tile(C, Fr, T, jnp.dtype(out_dtype).itemsize)
        n_chunks = -(-Fr // frt)
        fr_pad = n_chunks * frt
        Mc = frt * T
        Lc = (frt + 2) * T + 2

        xs = x + skip if skip is not None else x

        # Build the halo-padded, per-chunk, spatially flattened bf16 input in one shot so XLA
        # fuses pad + slice/stack + reshape + cast into a single HBM write of xf
        # (~(frt+2)/frt x the input bytes; the 9x im2col never touches HBM).
        xp = jnp.pad(xs, ((0, 0), (0, 0), (1, 1 + fr_pad - Fr), (0, 0)))
        chunks = jnp.stack(
            [xp[:, :, ch * frt: ch * frt + frt + 2, :] for ch in range(n_chunks)], axis=1)
        xf = chunks.reshape(B, n_chunks, C, (frt + 2) * T)
        xf = jnp.pad(xf, ((0, 0), (0, 0), (0, 0), (1, 1))).astype(jnp.bfloat16)

        # Fold the channel repeat into the weights (f32 sum, one bf16 cast) and group the nine
        # taps by dx: w_k[kx] is [2C, 3C] with the contraction ordered (ky-major, channel-minor),
        # matching the kernel's dy-stacked input windows.
        w_eff = self.weight[:, :C] + self.weight[:, C:]                       # [2C, C, 3, 3] f32
        w_k = jnp.transpose(w_eff, (3, 0, 2, 1)).reshape(3, C2, 3 * C).astype(jnp.bfloat16)
        bias = self.bias.reshape(C2, 1)                                       # f32

        # T-boundary validity masks in f32 (applied post-matmul; no bf16 VPU work on v5e).
        t_idx = jnp.arange(Mc, dtype=jnp.int32) % T
        edge = jnp.stack([t_idx != 0, t_idx != (T - 1)]).astype(jnp.float32)  # [2, Mc]

        kernel = functools.partial(_fusion_conv_glu_kernel, C=C, T=T, M=Mc)
        vmem_limit = int(min(96 << 20, max(32 << 20, 4 * step_bytes)))
        out = pl.pallas_call(
            kernel,
            out_shape=jax.ShapeDtypeStruct((B, C, fr_pad * T), out_dtype),
            grid=(B, n_chunks),
            in_specs=[
                pl.BlockSpec((1, 1, C, Lc), lambda b, ch: (b, ch, 0, 0)),
                pl.BlockSpec((3, C2, 3 * C), lambda b, ch: (0, 0, 0)),
                pl.BlockSpec((C2, 1), lambda b, ch: (0, 0)),
                pl.BlockSpec((2, Mc), lambda b, ch: (0, 0)),
            ],
            # Each chunk is stored at its final lane offset of the flattened output -> no
            # wrapper-side transpose, and every store is a full-width (multiple-of-128) slab.
            out_specs=pl.BlockSpec((1, C, Mc), lambda b, ch: (b, 0, ch)),
            compiler_params=pltpu.CompilerParams(
                dimension_semantics=("parallel", "parallel"),
                vmem_limit_bytes=vmem_limit),
        )(xf, w_k, bias, edge)

        out = out.reshape(B, C, fr_pad, T)
        if fr_pad != Fr:
            out = out[:, :, :Fr, :]
        return out


def _fusion_ref(x, skip, weight, bias):
    """Pure-JAX reference mirroring the PyTorch module (bf16 operands, f32 accumulate,
    to roughly match the kernel's matmul precision)."""
    xs = x + skip if skip is not None else x
    xr = jnp.concatenate([xs, xs], axis=1).astype(jnp.bfloat16)   # x.repeat(1, 2, 1, 1)
    y = lax.conv_general_dilated(
        xr, weight.astype(jnp.bfloat16), window_strides=(1, 1),
        padding=((1, 1), (1, 1)), dimension_numbers=('NCHW', 'OIHW', 'NCHW'),
        preferred_element_type=jnp.float32)
    y = y + bias.reshape(1, -1, 1, 1)
    c2 = y.shape[1]
    a, g = y[:, :c2 // 2], y[:, c2 // 2:]
    return a * jax.nn.sigmoid(g)                                   # F.glu(dim=1)


if __name__ == "__main__":
    key = jax.random.PRNGKey(0)
    xkey, skey, pkey = jax.random.split(key, 3)

    # Small NCHW spectrogram-feature shapes: [B, C, Fr, T]; Fr*T = 256 lanes per image.
    B, C, Fr, T = 2, 4, 16, 16
    x = jax.random.normal(xkey, (B, C, Fr, T), jnp.float32)
    skip = jax.random.normal(skey, (B, C, Fr, T), jnp.float32)

    layer = FusionLayerPallas(C, pkey)

    out = jax.block_until_ready(layer(x, skip))
    ref = _fusion_ref(x, skip, layer.weight, layer.bias)
    assert out.shape == ref.shape == (B, C, Fr, T), (out.shape, ref.shape)
    # Tolerance covers bf16 operand rounding, the folded (w[:, :C] + w[:, C:]) bf16 weight,
    # and the EUP approximate reciprocal inside the sigmoid.
    assert jnp.allclose(out, ref, atol=5e-3, rtol=5e-3), float(jnp.max(jnp.abs(out - ref)))

    # Also exercise the skip=None path of the forward.
    out2 = jax.block_until_ready(layer(x))
    ref2 = _fusion_ref(x, None, layer.weight, layer.bias)
    assert jnp.allclose(out2, ref2, atol=5e-3, rtol=5e-3)

    print("KERNEL_OK")
</pallas_src>

<mosaic_0001>
module attributes {stable_mosaic.version = 11 : i64} {
  func.func @_fusion_conv_glu_kernel(%arg0: i32, %arg1: i32, %arg2: memref<1x1x4x290xbf16, #tpu.memory_space<vmem>>, %arg3: memref<3x8x12xbf16, #tpu.memory_space<vmem>>, %arg4: memref<8x1xf32, #tpu.memory_space<vmem>>, %arg5: memref<2x256xf32, #tpu.memory_space<vmem>>, %arg6: memref<1x4x256xf32, #tpu.memory_space<vmem>>) attributes {dimension_semantics = [#tpu.dimension_semantics<parallel>, #tpu.dimension_semantics<parallel>], iteration_bounds = array<i64: 2, 1>, scalar_prefetch = 0 : i64, scratch_operands = 0 : i64, tpu.core_type = #tpu.core_type<tc>, window_params = [{transform_indices = @transform_0, window_bounds = array<i64: 1, 1, 4, 290>}, {pipeline_mode = #tpu.pipeline_mode<synchronous>, transform_indices = @transform_1, window_bounds = array<i64: 3, 8, 12>}, {pipeline_mode = #tpu.pipeline_mode<synchronous>, transform_indices = @transform_2, window_bounds = array<i64: 8, 1>}, {pipeline_mode = #tpu.pipeline_mode<synchronous>, transform_indices = @transform_3, window_bounds = array<i64: 2, 256>}, {transform_indices = @transform_4, window_bounds = array<i64: 1, 4, 256>}]} {
    %c1 = arith.constant 1 : index
    %c0 = arith.constant 0 : index
    %c0_0 = arith.constant 0 : index
    %0 = vector.load %arg3[%c1, %c0, %c0_0] : memref<3x8x12xbf16, #tpu.memory_space<vmem>>, vector<1x8x12xbf16>
    %1 = vector.shape_cast %0 : vector<1x8x12xbf16> to vector<8x12xbf16>
    %c0_1 = arith.constant 0 : index
    %c0_2 = arith.constant 0 : index
    %c0_3 = arith.constant 0 : index
    %c1_4 = arith.constant 1 : index
    %2 = vector.load %arg2[%c0_1, %c0_2, %c0_3, %c1_4] : memref<1x1x4x290xbf16, #tpu.memory_space<vmem>>, vector<1x1x4x256xbf16>
    %3 = vector.shape_cast %2 : vector<1x1x4x256xbf16> to vector<4x256xbf16>
    %c0_5 = arith.constant 0 : index
    %c0_6 = arith.constant 0 : index
    %c0_7 = arith.constant 0 : index
    %c17 = arith.constant 17 : index
    %4 = vector.load %arg2[%c0_5, %c0_6, %c0_7, %c17] : memref<1x1x4x290xbf16, #tpu.memory_space<vmem>>, vector<1x1x4x256xbf16>
    %5 = vector.shape_cast %4 : vector<1x1x4x256xbf16> to vector<4x256xbf16>
    %c0_8 = arith.constant 0 : index
    %c0_9 = arith.constant 0 : index
    %c0_10 = arith.constant 0 : index
    %c33 = arith.constant 33 : index
    %6 = vector.load %arg2[%c0_8, %c0_9, %c0_10, %c33] : memref<1x1x4x290xbf16, #tpu.memory_space<vmem>>, vector<1x1x4x256xbf16>
    %7 = vector.shape_cast %6 : vector<1x1x4x256xbf16> to vector<4x256xbf16>
    %8 = tpu.concatenate %3, %5, %7 in 0 : vector<4x256xbf16>, vector<4x256xbf16>, vector<4x256xbf16> -> vector<12x256xbf16>
    %cst = arith.constant dense<0.000000e+00> : vector<8x256xf32>
    %9 = tpu.matmul %1, %8, %cst {dimension_numbers = #tpu.dot_dimension_numbers<[1], [0], [0], [1], [0, 0, 1, 1], [], []>} : vector<8x12xbf16>, vector<12x256xbf16>, vector<8x256xf32> -> vector<8x256xf32>
    %c0_11 = arith.constant 0 : index
    %c0_12 = arith.constant 0 : index
    %c0_13 = arith.constant 0 : index
    %10 = vector.load %arg3[%c0_11, %c0_12, %c0_13] : memref<3x8x12xbf16, #tpu.memory_space<vmem>>, vector<1x8x12xbf16>
    %11 = vector.shape_cast %10 : vector<1x8x12xbf16> to vector<8x12xbf16>
    %c0_14 = arith.constant 0 : index
    %c0_15 = arith.constant 0 : index
    %c0_16 = arith.constant 0 : index
    %c0_17 = arith.constant 0 : index
    %12 = vector.load %arg2[%c0_14, %c0_15, %c0_16, %c0_17] : memref<1x1x4x290xbf16, #tpu.memory_space<vmem>>, vector<1x1x4x256xbf16>
    %13 = vector.shape_cast %12 : vector<1x1x4x256xbf16> to vector<4x256xbf16>
    %c0_18 = arith.constant 0 : index
    %c0_19 = arith.constant 0 : index
    %c0_20 = arith.constant 0 : index
    %c16 = arith.constant 16 : index
    %14 = vector.load %arg2[%c0_18, %c0_19, %c0_20, %c16] : memref<1x1x4x290xbf16, #tpu.memory_space<vmem>>, vector<1x1x4x256xbf16>
    %15 = vector.shape_cast %14 : vector<1x1x4x256xbf16> to vector<4x256xbf16>
    %c0_21 = arith.constant 0 : index
    %c0_22 = arith.constant 0 : index
    %c0_23 = arith.constant 0 : index
    %c32 = arith.constant 32 : index
    %16 = vector.load %arg2[%c0_21, %c0_22, %c0_23, %c32] : memref<1x1x4x290xbf16, #tpu.memory_space<vmem>>, vector<1x1x4x256xbf16>
    %17 = vector.shape_cast %16 : vector<1x1x4x256xbf16> to vector<4x256xbf16>
    %18 = tpu.concatenate %13, %15, %17 in 0 : vector<4x256xbf16>, vector<4x256xbf16>, vector<4x256xbf16> -> vector<12x256xbf16>
    %cst_24 = arith.constant dense<0.000000e+00> : vector<8x256xf32>
    %19 = tpu.matmul %11, %18, %cst_24 {dimension_numbers = #tpu.dot_dimension_numbers<[1], [0], [0], [1], [0, 0, 1, 1], [], []>} : vector<8x12xbf16>, vector<12x256xbf16>, vector<8x256xf32> -> vector<8x256xf32>
    %c2 = arith.constant 2 : index
    %c0_25 = arith.constant 0 : index
    %c0_26 = arith.constant 0 : index
    %20 = vector.load %arg3[%c2, %c0_25, %c0_26] : memref<3x8x12xbf16, #tpu.memory_space<vmem>>, vector<1x8x12xbf16>
    %21 = vector.shape_cast %20 : vector<1x8x12xbf16> to vector<8x12xbf16>
    %c0_27 = arith.constant 0 : index
    %c0_28 = arith.constant 0 : index
    %c0_29 = arith.constant 0 : index
    %c2_30 = arith.constant 2 : index
    %22 = vector.load %arg2[%c0_27, %c0_28, %c0_29, %c2_30] : memref<1x1x4x290xbf16, #tpu.memory_space<vmem>>, vector<1x1x4x256xbf16>
    %23 = vector.shape_cast %22 : vector<1x1x4x256xbf16> to vector<4x256xbf16>
    %c0_31 = arith.constant 0 : index
    %c0_32 = arith.constant 0 : index
    %c0_33 = arith.constant 0 : index
    %c18 = arith.constant 18 : index
    %24 = vector.load %arg2[%c0_31, %c0_32, %c0_33, %c18] : memref<1x1x4x290xbf16, #tpu.memory_space<vmem>>, vector<1x1x4x256xbf16>
    %25 = vector.shape_cast %24 : vector<1x1x4x256xbf16> to vector<4x256xbf16>
    %c0_34 = arith.constant 0 : index
    %c0_35 = arith.constant 0 : index
    %c0_36 = arith.constant 0 : index
    %c34 = arith.constant 34 : index
    %26 = vector.load %arg2[%c0_34, %c0_35, %c0_36, %c34] : memref<1x1x4x290xbf16, #tpu.memory_space<vmem>>, vector<1x1x4x256xbf16>
    %27 = vector.shape_cast %26 : vector<1x1x4x256xbf16> to vector<4x256xbf16>
    %28 = tpu.concatenate %23, %25, %27 in 0 : vector<4x256xbf16>, vector<4x256xbf16>, vector<4x256xbf16> -> vector<12x256xbf16>
    %cst_37 = arith.constant dense<0.000000e+00> : vector<8x256xf32>
    %29 = tpu.matmul %21, %28, %cst_37 {dimension_numbers = #tpu.dot_dimension_numbers<[1], [0], [0], [1], [0, 0, 1, 1], [], []>} : vector<8x12xbf16>, vector<12x256xbf16>, vector<8x256xf32> -> vector<8x256xf32>
    %c0_38 = arith.constant 0 : index
    %c0_39 = arith.constant 0 : index
    %30 = vector.load %arg5[%c0_38, %c0_39] : memref<2x256xf32, #tpu.memory_space<vmem>>, vector<1x256xf32>
    %c1_40 = arith.constant 1 : index
    %c0_41 = arith.constant 0 : index
    %31 = vector.load %arg5[%c1_40, %c0_41] : memref<2x256xf32, #tpu.memory_space<vmem>>, vector<1x256xf32>
    %c0_42 = arith.constant 0 : index
    %c0_43 = arith.constant 0 : index
    %32 = vector.load %arg4[%c0_42, %c0_43] : memref<8x1xf32, #tpu.memory_space<vmem>>, vector<8x1xf32>
    %33 = vector.broadcast %32 : vector<8x1xf32> to vector<8x256xf32>
    %34 = arith.addf %9, %33 : vector<8x256xf32>
    %35 = vector.broadcast %30 : vector<1x256xf32> to vector<8x256xf32>
    %36 = arith.mulf %19, %35 : vector<8x256xf32>
    %37 = arith.addf %34, %36 : vector<8x256xf32>
    %38 = vector.broadcast %31 : vector<1x256xf32> to vector<8x256xf32>
    %39 = arith.mulf %29, %38 : vector<8x256xf32>
    %40 = arith.addf %37, %39 : vector<8x256xf32>
    %41 = vector.extract_strided_slice %40 {offsets = [0, 0], sizes = [4, 256], strides = [1, 1]} : vector<8x256xf32> to vector<4x256xf32>
    %42 = vector.extract_strided_slice %40 {offsets = [4, 0], sizes = [4, 256], strides = [1, 1]} : vector<8x256xf32> to vector<4x256xf32>
    %cst_44 = arith.constant 0.000000e+00 : f32
    %43 = vector.broadcast %cst_44 : f32 to vector<4x256xf32>
    %44 = arith.subf %43, %42 : vector<4x256xf32>
    %45 = math.exp %44 : vector<4x256xf32>
    %cst_45 = arith.constant 1.000000e+00 : f32
    %46 = vector.broadcast %cst_45 : f32 to vector<4x256xf32>
    %47 = arith.addf %46, %45 : vector<4x256xf32>
    %48 = tpu.reciprocal %47 {approx = true} : vector<4x256xf32> -> vector<4x256xf32>
    %49 = arith.mulf %41, %48 : vector<4x256xf32>
    %c0_46 = arith.constant 0 : index
    %c0_47 = arith.constant 0 : index
    %c0_48 = arith.constant 0 : index
    %50 = vector.load %arg6[%c0_46, %c0_47, %c0_48] : memref<1x4x256xf32, #tpu.memory_space<vmem>>, vector<1x4x256xf32>
    %51 = vector.shape_cast %50 : vector<1x4x256xf32> to vector<4x256xf32>
    %52 = vector.shape_cast %49 : vector<4x256xf32> to vector<1x4x256xf32>
    tpu.vector_store %arg6[%c0_46, %c0_47, %c0_48], %52 {strides = array<i32>} : memref<1x4x256xf32, #tpu.memory_space<vmem>>, vector<1x4x256xf32>,
    return
  }
  func.func @transform_0(%arg0: i32, %arg1: i32) -> (i32, i32, i32, i32) {
    %c0_i32 = arith.constant 0 : i32
    %c0_i32_0 = arith.constant 0 : i32
    %c0_i32_1 = arith.constant 0 : i32
    return %arg0, %arg1, %c0_i32, %c0_i32_0 : i32, i32, i32, i32
  }
  func.func @transform_1(%arg0: i32, %arg1: i32) -> (i32, i32, i32) {
    %c0_i32 = arith.constant 0 : i32
    %c0_i32_0 = arith.constant 0 : i32
    %c0_i32_1 = arith.constant 0 : i32
    %c0_i32_2 = arith.constant 0 : i32
    return %c0_i32, %c0_i32_0, %c0_i32_1 : i32, i32, i32
  }
  func.func @transform_2(%arg0: i32, %arg1: i32) -> (i32, i32) {
    %c0_i32 = arith.constant 0 : i32
    %c0_i32_0 = arith.constant 0 : i32
    %c0_i32_1 = arith.constant 0 : i32
    return %c0_i32, %c0_i32_0 : i32, i32
  }
  func.func @transform_3(%arg0: i32, %arg1: i32) -> (i32, i32) {
    %c0_i32 = arith.constant 0 : i32
    %c0_i32_0 = arith.constant 0 : i32
    %c0_i32_1 = arith.constant 0 : i32
    return %c0_i32, %c0_i32_0 : i32, i32
  }
  func.func @transform_4(%arg0: i32, %arg1: i32) -> (i32, i32, i32) {
    %c0_i32 = arith.constant 0 : i32
    %c0_i32_0 = arith.constant 0 : i32
    return %arg0, %c0_i32, %arg1 : i32, i32, i32
  }
}

</mosaic_0001>

<bundles_post_ra>
// kernel: tpu_custom_call.1
= control target key start
LH: loop header
LB: loop body
LE: loop exit
PB: predicated region body
PF: predicated region fallthrough
CT: control target
= control target key end

     0   :  { %9 = vsyncpa [#allocation3], 0  ;;  %s1216_s0 = inlined_call_operand.hbm [shape: bf16[2,1,4,290], index: 0, kind: input, shape index: {}]   ;;  %s1217_s1 = inlined_call_operand.vmem [shape: bf16[3,8,12], index: 1, kind: input, shape index: {}]   ;;  %s1218_s2 = inlined_call_operand.vmem [shape: f32[8,1], index: 2, kind: input, shape index: {}]   ;;  %s1219_s3 = inlined_call_operand.vmem [shape: f32[2,256], index: 3, kind: input, shape index: {}]   ;;  %s1220_s4 = inlined_call_operand.hbm [shape: f32[2,4,256], index: 4, kind: output, shape index: {}]  }
   0x1   :  { %11 = vsyncpa [#allocation3 + $0x1], 0 }
   0x2   :  { %12 = vsyncpa [#allocation4], 0 }
   0x3   :  { %14 = vsyncpa [#allocation4 + $0x1], 0  ;;  %s970_s15 = smov 0   ;;  %s972_s16 = smov 0  }
   0x4   :  { %s974_s17 = smov 0   ;;  %s976_s18 = smov 0  }
   0x5   :  { %s978_s19 = smov 0   ;;  %s980_s20 = smov 0  }
   0x6 LB: > { %s716_s21 = sadd.s32 4294967295, %s935_s20   ;;  %s717_s22 = sadd.s32 4294967294, %s935_s20   ;;  %s935_s20 = sphi %s980_s20, %s20_s20   ;;  %s931_s19 = sphi %s978_s19, %s1235_s19   ;;  %s927_s18 = sphi %s976_s18, %s1234_s18   ;;  %s923_s17 = sphi %s974_s17, %s1233_s17   ;;  %s919_s16 = sphi %s972_s16, %s1232_s16   ;;  %s915_s15 = sphi %s970_s15, %s1231_s15  }
   0x7   : > { %s32_s23 = sadd.s32 1, %s931_s19  ;;  %s41_s24 = sadd.s32 1, %s923_s17 }
   0x8   : > { %p34_p0 = scmp.ge.s32.totalorder %s32_s23, 2  ;;  %p48_p1 = scmp.ne.s32.totalorder %s923_s17, %s919_s16 }
   0x9   : > { %p49_p2 = scmp.eq.s32.totalorder %s935_s20, 0  ;;  %p54_p3 = scmp.ne.s32.totalorder %s919_s16, %s915_s15 }
   0xa   : > { %s1237_s23 = smov (%p34_p0, %s32_s23), 0  ;;  %p55_p5 = scmp.eq.s32.totalorder %s716_s21, 0 }
   0xb   : > { %p1011_p4 = por %p49_p2, %p48_p1  ;;  %s36_s26 = ssub.s32 %s931_s19, %s1237_s23 }
   0xc   : > { %p143_p6 = scmp.eq.s32.totalorder %s716_s21, 1  ;;  %p39_p7 = scmp.eq.s32.totalorder %s36_s26, 0 }
   0xd   : > { %p1017_p8 = por %p55_p5, %p54_p3  ;;  %p149_p10 = scmp.eq.s32.totalorder %s717_s22, 1 }
   0xe   : > { %p1021_p9 = por %p143_p6, %p48_p1  ;;  %p754_p13 = scmp.lt.s32.totalorder %s935_s20, 2 }
   0xf   : > { %s1026_s29 = scalar_select %p39_p7, %s923_s17, %s41_s24  }
  0x10   : > { %s1224_s28 = scalar_select %p1021_p9, 1, 0 }
  0x11   : > { %p1028_p11 = por %p149_p10, %p54_p3  ;;  %s178_s5 = sand.u32 1, %s923_s17  }
  0x12   : > { %s739_s6 = smul.u32 6, %s178_s5  ;;  %p1038_p0 = pnand %p754_p13, %p1011_p4 }
  0x13   : > { %s1225_s30 = scalar_select %p1028_p11, 1, 0 }
  0x14   : > { %s740_s7 = smul.u32 96, %s931_s19  ;;  %s182_s12 = scalar_lea.vmem [#allocation2], %s739_s6 }
  0x15   : > { %s192_s13 = sshll.u32 %s182_s12, 4  ;;  %s179_s14 = scalar_lea.sflag [#allocation3], %s178_s5  ;;  %s1048_s13 = int_to_ptr.vmem [resolvable:$true] %s192_s13 }
  0x16   : > { %s1046_s11 = scalar_lea.hbm %s1216_s0, %s740_s7  ;;  %p825_p3 = pneg %p1038_p0 }
  0x17   : > { %s823_s21 = scalar_lea.hbm %s1046_s11, 96  ;;  %s828_s25 = scalar_lea.hbm %s1216_s0, 192 }
  0x18   : > { %p824_p2 = scmp.ne.s32.totalorder %s1046_s11, %s823_s21  ;;  %p829_p6 = scmp.lt.u32.totalorder %s1046_s11, %s1216_s0 }
  0x19   : > { %p830_p7 = scmp.lt.u32.totalorder %s828_s25, %s823_s21  ;;  %p832_p13 = scmp.lt.u32.totalorder %s823_s21, %s1046_s11 }
  0x1a   : > { %p826_p4 = pnand %p825_p3, %p824_p2 }
  0x1b   : > { %p831_p10 = por %p830_p7, %p829_p6 }
  0x1c   : > { %p827_p5 = pneg %p826_p4 }
  0x1d   : > { %p833_p12 = por %p832_p13, %p831_p10 }
  0x1f   : > { %p834_p1 = pnand %p833_p12, %p827_p5 }
  0x21   : > { %837 = shalt.err (!%p834_p1)
}
  0x22   : > { %s838_s5 = scalar_lea.vmem %s1048_s13, 96  ;;  %s937_s6 = smov [#allocation2]  }
  0x23   : > { %p839_p2 = scmp.ne.s32.totalorder %s1048_s13, %s838_s5  ;;  %s843_s9 = sshll.u32 %s937_s6, 4  ;;  %s844_s9 = int_to_ptr.vmem [resolvable:$false] %s843_s9 }
  0x24   : > { %s845_s10 = scalar_lea.vmem %s844_s9, 192  ;;  %p846_p9 = scmp.lt.s32.totalorder %s1048_s13, %s844_s9 }
  0x25   : > { %p841_p4 = pnand %p839_p2, %p825_p3  ;;  %p847_p6 = scmp.lt.s32.totalorder %s845_s10, %s838_s5 }
  0x27   : > { %p842_p11 = pneg %p841_p4  ;;  %p848_p7 = por %p847_p6, %p846_p9 }
  0x29   : > { %p849_p10 = pnand %p848_p7, %p842_p11 }
  0x2b   : > { %852 = shalt.err (!%p849_p10)
}
  0x2c   : > { %749 = dma.hbm_to_vmem [thread:$0]  (!%p1038_p0), %s1046_s11, 96, %s1048_s13, %s179_s14  }
  0x2d   : > { %p197_p12 = scmp.lt.s32.totalorder %s935_s20, 3  ;;  %p1227_p1 = scmp.ge.s32.totalorder %s935_s20, 1 }
  0x2f   : > { %p198_p3 = pnand %p1227_p1, %p197_p12 }
  0x30   : > { %s1079_s12 = sand.u32 (!%p198_p3), 1, %s919_s16  }
  0x31   : > { %201 = sbr.rel (%p198_p3) target bundleno = 592 (0x250), region = 36  ;;  %s204_s22 = scalar_lea.sflag (!%p198_p3), [#allocation3], %s1079_s12 }
  0x32   : > { %s741_s21 = smul.u32 (!%p198_p3), 6, %s1079_s12 }
  0x34   : > { %s1083_s24 = scalar_lea.vmem (!%p198_p3), [#allocation2], %s741_s21 }
  0x38   : > { %906 = dma.done.wait (%p1017_p8), %s204_s22, 96  }
  0x39   : > { %908 = vsyncadd (%p1017_p8), %s204_s22, 4294967200  ;;  %v242_v0 = vlaneseq  ;;  %v938_v1 = vmov 1983009808   ;;  %v236_v6 = vld [vmem:[%s1083_s24] sm:$0x3f]  ;;  %s939_s8 = smov 96  }
  0x3a   : > { %v240_v2 = vunpack.c.l.s4 %v938_v1  ;;  %v369_v7 = vld [vmem:[%s1083_s24] sm:$0x3f]  ;;  %v254_v9 = vcombine.low %v236_v6, %v236_v6  ;;  %v238_v10 = vcombine.high %v236_v6, %v236_v6  ;;  %s940_s11 = smov 112   ;;  %v941_v24 = vmov 0   ;;  %s942_s27 = smov 127  }
  0x3b   : > { %v1089_v3 = vshrl.u32 %v242_v0, 7  ;;  %v387_v13 = vcombine.low %v369_v7, %v369_v7  ;;  %v371_v20 = vcombine.high %v369_v7, %v369_v7  ;;  %358 = vmatprep.mubr.bf16.mxu0 %v941_v24  ;;  %482 = vmatprep.mubr.bf16.mxu1 %v941_v24  ;;  %vm283_vm0 = vcmask 1041408   ;;  %v724_v29 = vld.sshfl [vmem:[%s1083_s24] sm:$0x33 pattern:$0x76325410] }
  0x3c   : > { %v241_v4 = vunpack.c.0.s8 %v240_v2  ;;  %810 = vset.pattern.permute.xlu0 %v941_v24  ;;  %vm293_vm1 = vcmask 1043456   ;;  %vm280_vm2 = vcmask 785408   ;;  %vm269_vm3 = vcmask 916480   ;;  %v300_v54 = vld [vmem:[%s1217_s1] sm:$0xf]  ;;  %s943_s25 = smov 126  }
  0x3d   : > { %v310_v34 = vcombine.high %v724_v29, %v724_v29  ;;  %vm321_vm4 = vcmask 1045504   ;;  %vm317_vm5 = vcmask 97280   ;;  %v494_v1 = vld [vmem:[%s1218_s2] sm:$0xff]  ;;  %vm509_vm6 = vcmask 1039360   ;;  %s616_s5 = scalar_lea.sflag [#allocation4], %s1079_s12  ;;  %p1228_p9 = scmp.ne.s32.totalorder %s1224_s28, 0 }
  0x3e   : > { %v244_v5 = vsub.s32 %v241_v4, %v1089_v3  ;;  %vm438_vm7 = vcmask 1031168  }
  0x40   : > { %v245_v8 = vrot.slane %v236_v6, %v244_v5  ;;  %v261_v11 = vrot.slane %v254_v9, %v244_v5  ;;  %v252_v14 = vrot.slane %v238_v10, %v244_v5  ;;  %v394_v15 = vrot.slane %v387_v13, %v244_v5 }
  0x41   : > { %v1094_v17 = vrot.slane %v369_v7, %v244_v5  ;;  %v1098_v22 = vrot.slane %v371_v20, %v244_v5 }
  0x42   : > { %276 = vrot.lane.b32.xlu0 %v245_v8, %s939_s8  ;;  %267 = vrot.lane.b32.xlu1 %v245_v8, %s940_s11  ;;  %v272_v12 = vcombine.low %v245_v8, %v245_v8  ;;  %v273_v16 = vcombine.low %v252_v14, %v252_v14  ;;  %v262_v18 = vcombine.high %v261_v11, %v261_v11 }
  0x43   : > { %v395_v19 = vcombine.high %v394_v15, %v394_v15  ;;  %v404_v21 = vcombine.low %v1094_v17, %v1094_v17  ;;  %v405_v23 = vcombine.low %v1098_v22, %v1098_v22  ;;  %v253_v35 = vcombine.high %v245_v8, %v245_v8 }
  0x44   : > { %v386_v53 = vcombine.high %v1094_v17, %v1094_v17 }
  0x46   : > { %263 = vrot.lane.b32.xlu0 %v261_v11, %s940_s11  ;;  %274 = vrot.lane.b32.xlu1 %v272_v12, %s939_s8  ;;  %v723_v11 = vld [vmem:[%s1217_s1 + $0x4] sm:$0xf] }
  0x4a   : > { %396 = vrot.lane.b32.xlu0 %v394_v15, %s940_s11  ;;  %278 = vrot.lane.b32.xlu1 %v273_v16, %s939_s8 }
  0x4e   : > { %265 = vrot.lane.b32.xlu0 %v262_v18, %s940_s11  ;;  %398 = vrot.lane.b32.xlu1 %v395_v19, %s940_s11  ;;  %v727_v18 = vld [vmem:[%s1217_s1 + $0x8] sm:$0xf] }
  0x52   : > { %400 = vrot.lane.b32.xlu0 %v1094_v17, %s940_s11  ;;  %406 = vrot.lane.b32.xlu1 %v404_v21, %s939_s8  ;;  %s722_s11 = sshll.u32 %s1079_s12, 3 }
  0x53   : > { %s231_s13 = scalar_lea.vmem [#allocation5], %s722_s11 }
  0x54   : > { %s632_s14 = sshll.u32 %s231_s13, 4  ;;  %s1169_s14 = int_to_ptr.vmem [resolvable:$true] %s632_s14 }
  0x55   : > { %s853_s6 = scalar_lea.vmem %s1169_s14, 128 }
  0x56   : > { %408 = vrot.lane.b32.xlu0 %v1094_v17, %s939_s8  ;;  %410 = vrot.lane.b32.xlu1 %v405_v23, %s939_s8  ;;  %v565_v23 = vsub.s32 0, %v1089_v3  ;;  %p854_p8 = scmp.ne.s32.totalorder %s1169_s14, %s853_s6 }
  0x58   : > { %p855_p11 = pnand %p854_p8, %p1228_p9 }
  0x5a   : > { %p856_p0 = pneg %p855_p11 }
  0xb4   : > { %v277_v25 = vpop.permute.xlu0 %276  ;;  %v268_v26 = vpop.permute.xlu1 %267 }
  0xb5   : > { %v292_v30 = vsel %vm283_vm0, %v252_v14, %v268_v26 }
  0xb8   : > { %v264_v27 = vpop.permute.xlu0 %263  ;;  %v275_v28 = vpop.permute.xlu1 %274 }
  0xb9   : > { %v281_v38 = vsel %vm280_vm2, %v275_v28, %v277_v25 }
  0xbc   : > { %v397_v31 = vpop.permute.xlu0 %396  ;;  %v279_v32 = vpop.permute.xlu1 %278 }
  0xbd   : > { %v299_v33 = vsel %vm293_vm1, %v292_v30, %v279_v32  ;;  %v282_v39 = vsel %vm280_vm2, %v277_v25, %v279_v32  ;;  %v569_v25 = vsub.s32 1, %v1089_v3 }
  0xbe   : > { %507 = vrot.lane.b32.xlu0 %v299_v33, %s942_s27 }
  0xc0   : > { %v266_v36 = vpop.permute.xlu0 %265  ;;  %v399_v37 = vpop.permute.xlu1 %398 }
  0xc1   : > { %v270_v40 = vsel %vm269_vm3, %v264_v27, %v266_v36  ;;  %v271_v41 = vsel %vm269_vm3, %v266_v36, %v268_v26  ;;  %v402_v55 = vsel %vm269_vm3, %v397_v31, %v399_v37 }
  0xc2   : > { %v286_v42 = vsel %vm283_vm0, %v245_v8, %v270_v40  ;;  %v314_v43 = vsel %vm283_vm0, %v310_v34, %v271_v41  ;;  %v289_v44 = vsel %vm283_vm0, %v253_v35, %v271_v41  ;;  %v312_v45 = vsel %vm283_vm0, %v724_v29, %v270_v40 }
  0xc3   : > { %v295_v46 = vsel %vm293_vm1, %v286_v42, %v281_v38  ;;  %v316_v47 = vsel %vm293_vm1, %v314_v43, %v282_v39  ;;  %v297_v48 = vsel %vm293_vm1, %v289_v44, %v282_v39  ;;  %v315_v49 = vsel %vm293_vm1, %v312_v45, %v281_v38  ;;  %v730_v39 = vld [vmem:[%s1219_s3 + $0x1] ss:$2 sm:$0x3] }
  0xc4   : > { %v401_v50 = vpop.permute.xlu0 %400  ;;  %503 = vrot.lane.b32.xlu0 %v295_v46, %s942_s27  ;;  %725 = vmatprep.subr.msk.bf16.mxu0 %vm321_vm4, %v316_v47  ;;  %v407_v51 = vpop.permute.xlu1 %406  ;;  %v322_v52 = vsel %vm321_vm4, %v315_v49, 0  ;;  %v416_v61 = vsel %vm283_vm0, %v1094_v17, %v402_v55  ;;  %v581_v40 = vrot.slane %v730_v39, %v565_v23  ;;  %v585_v41 = vrot.slane %v730_v39, %v569_v25 }
  0xc5   : > { %505 = vrot.lane.b32.xlu1 %v297_v48, %s942_s27  ;;  %327 = vmatpush1.bf16.msra.mxu0 %v322_v52  ;;  %v403_v56 = vsel %vm269_vm3, %v399_v37, %v401_v50  ;;  %v422_v2 = vsel %vm283_vm0, %v1098_v22, %v401_v50  ;;  %s738_s27 = sshll.u32 %s927_s18, 7  ;;  %s944_s18 = smov [#allocation5]  }
  0xc6   : > { %v419_v62 = vsel %vm283_vm0, %v386_v53, %v403_v56  ;;  %s1167_s7 = scalar_lea.hbm %s1220_s4, %s738_s27  ;;  %s857_s9 = sshll.u32 %s944_s18, 4  ;;  %s858_s9 = int_to_ptr.vmem [resolvable:$false] %s857_s9 }
  0xc7   : > { %s859_s10 = scalar_lea.vmem %s858_s9, 256  ;;  %p860_p5 = scmp.lt.s32.totalorder %s1169_s14, %s858_s9 }
  0xc8   : > { %v409_v57 = vpop.permute.xlu0 %408  ;;  %v411_v58 = vpop.permute.xlu1 %410  ;;  %726 = vmatmul.mubr.msk.bf16.vlgmr.msra.gmra.mrb[0].mxu0 %vm317_vm5, %v300_v54  ;;  %p861_p13 = scmp.lt.s32.totalorder %s859_s10, %s853_s6 }
  0xc9   : > { %v412_v59 = vsel %vm280_vm2, %v407_v51, %v409_v57  ;;  %v413_v60 = vsel %vm280_vm2, %v409_v57, %v411_v58  ;;  %553 = vmatprep.mubr.bf16.mxu0 %v941_v24  ;;  %v428_v4 = vsel %vm293_vm1, %v422_v2, %v411_v58  ;;  %v491_v24 = vld [vmem:[%s1219_s3] ss:$2 sm:$0x3] }
  0xca   : > { %v424_v63 = vsel %vm293_vm1, %v416_v61, %v412_v59  ;;  %v426_v0 = vsel %vm293_vm1, %v419_v62, %v413_v60  ;;  %v566_v26 = vrot.slane %v491_v24, %v565_v23  ;;  %v570_v27 = vrot.slane %v491_v24, %v569_v25  ;;  %p862_p2 = por %p861_p13, %p860_p5 }
  0xcb   : > { %432 = vrot.lane.b32.xlu1 %v424_v63, %s943_s25  ;;  %434 = vrot.lane.b32.xlu0 %v426_v0, %s943_s25 }
  0xcc   : > { %p863_p4 = pnand %p862_p2, %p856_p0 }
  0xcf   : > { %436 = vrot.lane.b32.xlu1 %v428_v4, %s943_s25  ;;  %497 = vperm.xlu0 %810, %v494_v1  }
 0x130   : > { %v508_v5 = vpop.permute.xlu0 %507 }
 0x136   : > { %v504_v6 = vpop.permute.xlu0 %503 }
 0x137   : > { %v506_v7 = vpop.permute.xlu1 %505 }
 0x138   : > { %v510_v8 = vsel %vm509_vm6, %v504_v6, %v506_v7  ;;  %v511_v9 = vsel %vm509_vm6, %v506_v7, %v508_v5 }
 0x139   : > { %v516_v10 = vsel %vm321_vm4, %v510_v8, 0  ;;  %731 = vmatprep.subr.msk.bf16.mxu0 %vm321_vm4, %v511_v9 }
 0x13a   : > { %522 = vmatpush1.bf16.msra.mxu0 %v516_v10 }
 0x13d   : > { %732 = vmatmul.mubr.msk.bf16.vlgmr.msra.gmra.mrb[4].mxu0 %vm317_vm5, %v723_v11  ;;  %v435_v12 = vpop.permute.xlu0 %434  ;;  %v433_v13 = vpop.permute.xlu1 %432 }
 0x13e   : > { %v439_v14 = vsel %vm438_vm7, %v433_v13, %v435_v12 }
 0x13f   : > { %v445_v17 = vsel %vm321_vm4, %v439_v14, 0 }
 0x141   : > { %v437_v15 = vpop.permute.xlu1 %436 }
 0x142   : > { %v440_v16 = vsel %vm438_vm7, %v435_v12, %v437_v15 }
 0x143   : > { %728 = vmatprep.subr.msk.bf16.mxu1 %vm321_vm4, %v440_v16 }
 0x144   : > { %451 = vmatpush1.bf16.msra.mxu1 %v445_v17 }
 0x147   : > { %729 = vmatmul.mubr.msk.bf16.vlgmr.msra.gmra.mrb[0].mxu1 %vm317_vm5, %v727_v18 }
 0x14e   : > { %v498_v28 = vpop.permute.xlu0 %497 }
 0x19b   : > { %v360_v19 = vpop.f32.mrb[0].mxu0 }
 0x19c   : > { %v362_v20 = vpop.f32.mrb[1].mxu0  ;;  %v573_v29 = vmul.f32 %v566_v26, %v360_v19 }
 0x19d   : > { %v364_v21 = vpop.f32.mrb[2].mxu0  ;;  %v574_v30 = vmul.f32 %v570_v27, %v362_v20 }
 0x19e   : > { %v365_v22 = vpop.f32.mrb[3].mxu0 }
 0x210   : > { %v555_v31 = vpop.f32.mrb[4].mxu0 }
 0x211   : > { %v556_v32 = vadd.f32 %v555_v31, %v498_v28  ;;  %v557_v33 = vpop.f32.mrb[5].mxu0 }
 0x212   : > { %v558_v34 = vadd.f32 %v557_v33, %v498_v28  ;;  %v559_v35 = vpop.f32.mrb[6].mxu0 }
 0x213   : > { %v575_v36 = vadd.f32 %v573_v29, %v556_v32  ;;  %v560_v37 = vpop.f32.mrb[7].mxu0 }
 0x214   : > { %v576_v38 = vadd.f32 %v574_v30, %v558_v34 }
 0x21a   : > { %v484_v3 = vpop.f32.mrb[0].mxu1 }
 0x21b   : > { %v588_v42 = vmul.f32 %v581_v40, %v484_v3  ;;  %v486_v43 = vpop.f32.mrb[1].mxu1 }
 0x21c   : > { %v589_v44 = vmul.f32 %v585_v41, %v486_v43  ;;  %v488_v45 = vpop.f32.mrb[2].mxu1 }
 0x21d   : > { %v590_v46 = vadd.f32 %v588_v42, %v575_v36  ;;  %v489_v47 = vpop.f32.mrb[3].mxu1 }
 0x21e   : > { %v591_v48 = vadd.f32 %v589_v44, %v576_v38 }
 0x21f   : > { %v592_v49 = vsub.f32 0.0, %v590_v46 }
 0x220   : > { %v593_v50 = vsub.f32 0.0, %v591_v48 }
 0x221   : > { %v594_v51 = vmul.f32 1.442695, %v592_v49 }
 0x222   : > { %v596_v52 = vmul.f32 1.442695, %v593_v50 }
 0x223   : > { %815 = vpow2.f32 %v594_v51 }
 0x224   : > { %817 = vpow2.f32 %v596_v52 }
 0x22d   : > { %v816_v53 = vpop.eup %815 }
 0x22e   : > { %v818_v54 = vpop.eup %817  ;;  %v598_v55 = vadd.f32 1.0, %v816_v53 }
 0x22f   : > { %v599_v56 = vadd.f32 1.0, %v818_v54 }
 0x230   : > { %819 = vrcp.f32 %v598_v55 }
 0x231   : > { %821 = vrcp.f32 %v599_v56 }
 0x23a   : > { %v820_v57 = vpop.eup %819 }
 0x23b   : > { %v822_v58 = vpop.eup %821  ;;  %v604_v59 = vrot.slane %v820_v57, 4 }
 0x23c   : > { %v605_v60 = vrot.slane %v822_v58, 4 }
 0x23d   : > { %v608_v61 = vmul.f32 %v604_v59, %v590_v46 }
 0x23e   : > { %v609_v62 = vmul.f32 %v605_v60, %v591_v48 }
 0x240   : > { %v612_v63 = vcombine.low %v608_v61, %v609_v62 }
 0x242   : > { %614 = vst [vmem:[%s231_s13] sm:$0xff] %v612_v63 }
 0x243   : > { %866 = shalt.err (!%p863_p4)
}
 0x244   : > { %s867_s12 = scalar_lea.hbm %s1167_s7, 128  ;;  %s871_s24 = scalar_lea.hbm %s1220_s4, 256 }
 0x245   : > { %p868_p6 = scmp.ne.s32.totalorder %s1167_s7, %s867_s12  ;;  %p872_p12 = scmp.lt.u32.totalorder %s1167_s7, %s1220_s4 }
 0x246   : > { %p873_p1 = scmp.lt.u32.totalorder %s871_s24, %s867_s12  ;;  %p875_p8 = scmp.lt.u32.totalorder %s867_s12, %s1167_s7 }
 0x247   : > { %p869_p7 = pnand %p868_p6, %p1228_p9 }
 0x248   : > { %p874_p3 = por %p873_p1, %p872_p12 }
 0x249   : > { %p870_p10 = pneg %p869_p7 }
 0x24a   : > { %p876_p11 = por %p875_p8, %p874_p3 }
 0x24c   : > { %p877_p0 = pnand %p876_p11, %p870_p10 }
 0x24e   : > { %880 = shalt.err (!%p877_p0)
}
 0x24f   : > { %744 = dma.vmem_to_hbm [thread:$0]  (%p1228_p9), %s1169_s14, 128, %s1167_s7, %s616_s5  }
 0x250 PF: > { %s644_s27 = sand.u32 1, %s915_s15   ;;  %p1229_p5 = scmp.ne.s32.totalorder %s1225_s30, 0 }
 0x251   : > { %p1230_p13 = scmp.ge.s32.totalorder %s935_s20, 2  ;;  %s645_s13 = scalar_lea.sflag [#allocation4], %s644_s27 }
 0x253   : > { %p751_p2 = pnand %p1230_p13, %p1229_p5 }
 0x255   : > { %910 = dma.done.wait (!%p751_p2), %s645_s13, 128  }
 0x256   : > { %912 = vsyncadd (!%p751_p2), %s645_s13, 4294967168  ;;  %s20_s20 = sadd.s32 1, %s935_s20   ;;  %s1231_s15 = smov %s919_s16 }
 0x257   : > { %p17_p4 = scmp.ge.s32.totalorder %s20_s20, 4   ;;  %s1232_s16 = smov %s923_s17 }
 0x258   : > { %s1233_s17 = smov %s1026_s29  ;;  %s1234_s18 = smov %s931_s19 }
 0x259   : > { %s1235_s19 = smov %s1237_s23  ;;  %19 = sbr.rel (!%p17_p4) target bundleno = 6 (0x6), region = 84 }
 0x260   :  { %650 = vsyncpa [#allocation3], 1 }
 0x261   :  { %652 = vsyncpa [#allocation3 + $0x1], 1 }
 0x262   :  { %653 = vsyncpa [#allocation4], 1 }
 0x263   :  { %655 = vsyncpa [#allocation4 + $0x1], 1 }

</bundles_post_ra>
